<compile_context>
chip_gen: v7x
topology: tpu7x:2x2x1
jax: 0.10.0
libtpu: 0.0.40
codegen_flags: <defaults>
</compile_context>

<pallas_src>
import functools

import jax
import jax.numpy as jnp
from jax.experimental import pallas as pl
from jax.experimental.pallas import tpu as pltpu

LANES = 128      # lane width of a vreg
MAX_ROWS = 64    # sublane-rows per block -> up to 64 * 128 = 8192 boxes per grid step


def _tiling(n):
    """Return (padded_row_count M, rows_per_block R) for a (4, M, 128) slab."""
    rows_needed = max(1, (n + LANES - 1) // LANES)
    r = min(MAX_ROWS, ((rows_needed + 7) // 8) * 8)   # multiple of 8 sublanes
    m = ((rows_needed + r - 1) // r) * r              # multiple of r (so grid divides)
    return m, r


def _piou_tile(n_ref, pred_ref, tgt_ref, *, eps, lam, rows):
    """Per-box PIoU2 loss for one (4, rows, 128) block; padded boxes -> 0."""
    b1x1, b1y1, b1x2, b1y2 = pred_ref[0], pred_ref[1], pred_ref[2], pred_ref[3]
    b2x1, b2y1, b2x2, b2y2 = tgt_ref[0], tgt_ref[1], tgt_ref[2], tgt_ref[3]

    w1 = b1x2 - b1x1
    h1 = b1y2 - b1y1 + eps
    w2 = b2x2 - b2x1
    h2 = b2y2 - b2y1 + eps

    iw = jnp.maximum(jnp.minimum(b1x2, b2x2) - jnp.maximum(b1x1, b2x1), 0.0)
    ih = jnp.maximum(jnp.minimum(b1y2, b2y2) - jnp.maximum(b1y1, b2y1), 0.0)
    inter = iw * ih
    union = w1 * h1 + w2 * h2 - inter + eps
    iou = inter / union

    dw1 = jnp.abs(jnp.minimum(b1x2, b1x1) - jnp.minimum(b2x2, b2x1))
    dw2 = jnp.abs(jnp.maximum(b1x2, b1x1) - jnp.maximum(b2x2, b2x1))
    dh1 = jnp.abs(jnp.minimum(b1y2, b1y1) - jnp.minimum(b2y2, b2y1))
    dh2 = jnp.abs(jnp.maximum(b1y2, b1y1) - jnp.maximum(b2y2, b2y1))
    p = ((dw1 + dw2) / jnp.abs(w2) + (dh1 + dh2) / jnp.abs(h2)) * 0.25

    # PIoU2 branch of the reference (PIoU=False, PIoU2=True)
    l_v1 = 2.0 - iou - jnp.exp(-(p * p))
    x = jnp.exp(-p) * lam
    loss = 3.0 * x * jnp.exp(-(x * x)) * l_v1

    # Mask padded boxes (all-zero boxes give 0/0 = NaN in P above).
    row = jax.lax.broadcasted_iota(jnp.int32, (rows, LANES), 0)
    lane = jax.lax.broadcasted_iota(jnp.int32, (rows, LANES), 1)
    gidx = (pl.program_id(0) * rows + row) * LANES + lane
    return jnp.where(gidx < n_ref[0], loss, 0.0)


def _piou_none_kernel(n_ref, pred_ref, tgt_ref, loss_ref, *, eps, lam, rows):
    loss_ref[...] = _piou_tile(n_ref, pred_ref, tgt_ref, eps=eps, lam=lam, rows=rows)


def _piou_sum_kernel(n_ref, pred_ref, tgt_ref, acc_ref, *, eps, lam, rows):
    @pl.when(pl.program_id(0) == 0)
    def _init():
        acc_ref[...] = jnp.zeros_like(acc_ref)

    loss = _piou_tile(n_ref, pred_ref, tgt_ref, eps=eps, lam=lam, rows=rows)
    acc_ref[...] += jnp.sum(loss, axis=(0, 1), keepdims=True)


@functools.partial(jax.jit, static_argnames=("eps", "lam", "loss_weight",
                                             "reduction", "avg_factor"))
def piou_loss_pallas(pred, target, gt_bbox=None, *, eps=1e-6, lam=1.3,
                     loss_weight=1.0, reduction="mean", avg_factor=None):
    """PIoULoss.forward(pred, target, gt_bbox) with weight=None.

    pred / target: (n, 4) boxes (x1, y1, x2, y2).  gt_bbox is unused, as in the
    original forward.  Returns (n, 1) for reduction='none', a scalar otherwise.
    """
    # TODO(synk): the per-box `weight` tensor path of @weighted_loss (including
    # the all-zero-weight early exit) is not implemented; weight=None only.
    del gt_bbox
    assert pred.shape == target.shape and pred.shape[-1] == 4
    n = pred.shape[0]
    m, r = _tiling(n)
    n_pad = m * LANES

    def prep(b):
        bt = b.astype(jnp.float32).T                              # (4, n)
        return jnp.pad(bt, ((0, 0), (0, n_pad - n))).reshape(4, m, LANES)

    pred_t = prep(pred)
    tgt_t = prep(target)
    n_arr = jnp.asarray([n], dtype=jnp.int32)

    grid = (m // r,)
    in_specs = [
        pl.BlockSpec((4, r, LANES), lambda i, n_ref: (0, i, 0)),
        pl.BlockSpec((4, r, LANES), lambda i, n_ref: (0, i, 0)),
    ]

    if reduction == "none":
        loss_padded = pl.pallas_call(
            functools.partial(_piou_none_kernel, eps=eps, lam=lam, rows=r),
            out_shape=jax.ShapeDtypeStruct((m, LANES), jnp.float32),
            grid_spec=pltpu.PrefetchScalarGridSpec(
                num_scalar_prefetch=1,
                grid=grid,
                in_specs=in_specs,
                out_specs=pl.BlockSpec((r, LANES), lambda i, n_ref: (i, 0)),
            ),
            compiler_params=pltpu.CompilerParams(
                dimension_semantics=("parallel",)),
        )(n_arr, pred_t, tgt_t)
        per_box = loss_padded.reshape(-1)[:n]
        return loss_weight * per_box[:, None]          # (n, 1), matches torch shape

    # 'sum' / 'mean': reduction folded into the kernel (scalar VMEM accumulator,
    # grid axis is a reduction -> 'arbitrary').
    total = pl.pallas_call(
        functools.partial(_piou_sum_kernel, eps=eps, lam=lam, rows=r),
        out_shape=jax.ShapeDtypeStruct((1, 1), jnp.float32),
        grid_spec=pltpu.PrefetchScalarGridSpec(
            num_scalar_prefetch=1,
            grid=grid,
            in_specs=in_specs,
            out_specs=pl.BlockSpec((1, 1), lambda i, n_ref: (0, 0)),
        ),
        compiler_params=pltpu.CompilerParams(
            dimension_semantics=("arbitrary",)),
    )(n_arr, pred_t, tgt_t)[0, 0]

    if reduction == "sum":
        return loss_weight * total
    # 'mean' with weight=None: sum over all n elements / n (or / avg_factor).
    denom = jnp.float32(n if avg_factor is None else avg_factor)
    return loss_weight * total / denom


def _piou_loss_ref(pred, target, lam=1.3, eps=1e-6):
    """Pure-JAX reference of mmdet's piou_loss (PIoU2 branch), per-box."""
    b1x1, b1y1, b1x2, b1y2 = pred[:, 0], pred[:, 1], pred[:, 2], pred[:, 3]
    b2x1, b2y1, b2x2, b2y2 = target[:, 0], target[:, 1], target[:, 2], target[:, 3]
    w1, h1 = b1x2 - b1x1, b1y2 - b1y1 + eps
    w2, h2 = b2x2 - b2x1, b2y2 - b2y1 + eps
    inter = (jnp.maximum(jnp.minimum(b1x2, b2x2) - jnp.maximum(b1x1, b2x1), 0.0)
             * jnp.maximum(jnp.minimum(b1y2, b2y2) - jnp.maximum(b1y1, b2y1), 0.0))
    union = w1 * h1 + w2 * h2 - inter + eps
    iou = inter / union
    dw1 = jnp.abs(jnp.minimum(b1x2, b1x1) - jnp.minimum(b2x2, b2x1))
    dw2 = jnp.abs(jnp.maximum(b1x2, b1x1) - jnp.maximum(b2x2, b2x1))
    dh1 = jnp.abs(jnp.minimum(b1y2, b1y1) - jnp.minimum(b2y2, b2y1))
    dh2 = jnp.abs(jnp.maximum(b1y2, b1y1) - jnp.maximum(b2y2, b2y1))
    p = ((dw1 + dw2) / jnp.abs(w2) + (dh1 + dh2) / jnp.abs(h2)) / 4.0
    l_v1 = 1.0 - iou - jnp.exp(-p ** 2) + 1.0
    x = jnp.exp(-p) * lam
    return 3.0 * x * jnp.exp(-x ** 2) * l_v1


if __name__ == "__main__":
    key = jax.random.PRNGKey(0)
    k1, k2, k3, k4 = jax.random.split(key, 4)
    n = 8  # number of boxes

    # valid (x1, y1, x2, y2) boxes: x2 > x1, y2 > y1
    p_xy = jax.random.uniform(k1, (n, 2), jnp.float32, 0.0, 10.0)
    p_wh = jax.random.uniform(k2, (n, 2), jnp.float32, 0.5, 5.0)
    pred = jnp.concatenate([p_xy, p_xy + p_wh], axis=1)

    t_xy = jax.random.uniform(k3, (n, 2), jnp.float32, 0.0, 10.0)
    t_wh = jax.random.uniform(k4, (n, 2), jnp.float32, 0.5, 5.0)
    target = jnp.concatenate([t_xy, t_xy + t_wh], axis=1)

    # PIoULoss(eps=1e-6, reduction='mean', loss_weight=1.0).forward(pred, target, gt_bbox)
    out_mean = piou_loss_pallas(pred, target, None, eps=1e-6,
                                loss_weight=1.0, reduction="mean")
    out_none = piou_loss_pallas(pred, target, None, eps=1e-6,
                                loss_weight=1.0, reduction="none")
    out_mean, out_none = jax.block_until_ready((out_mean, out_none))

    per_box_ref = _piou_loss_ref(pred, target, lam=1.3, eps=1e-6)
    ref_mean = jnp.mean(per_box_ref)

    assert out_none.shape == (n, 1), out_none.shape
    assert jnp.allclose(out_none[:, 0], per_box_ref, rtol=1e-4, atol=1e-5), (
        out_none[:, 0], per_box_ref)
    assert jnp.allclose(out_mean, ref_mean, rtol=1e-4, atol=1e-5), (out_mean, ref_mean)

    print("KERNEL_OK")
</pallas_src>

<mosaic_0001>
module attributes {stable_mosaic.version = 11 : i64} {
  func.func @_piou_sum_kernel(%arg0: i32, %arg1: memref<1xi32, #tpu.memory_space<smem>>, %arg2: memref<4x8x128xf32, #tpu.memory_space<vmem>>, %arg3: memref<4x8x128xf32, #tpu.memory_space<vmem>>, %arg4: memref<1x1xf32, #tpu.memory_space<vmem>>) attributes {dimension_semantics = [#tpu.dimension_semantics<arbitrary>], iteration_bounds = array<i64: 1>, scalar_prefetch = 1 : i64, scratch_operands = 0 : i64, tpu.core_type = #tpu.core_type<tc>, window_params = [{transform_indices = @transform_0, window_bounds = array<i64: 4, 8, 128>}, {transform_indices = @transform_1, window_bounds = array<i64: 4, 8, 128>}, {pipeline_mode = #tpu.pipeline_mode<synchronous>, transform_indices = @transform_2, window_bounds = array<i64: 1, 1>}]} {
    %c0_i32 = arith.constant 0 : i32
    %0 = arith.cmpi eq, %arg0, %c0_i32 : i32
    %1 = arith.extui %0 : i1 to i32
    %c0_i32_0 = arith.constant 0 : i32
    %2 = arith.cmpi ne, %1, %c0_i32_0 : i32
    scf.if %2 {
      %cst_39 = arith.constant 0.000000e+00 : f32
      %111 = vector.broadcast %cst_39 : f32 to vector<1x1xf32>
      %c0_40 = arith.constant 0 : index
      %c0_41 = arith.constant 0 : index
      %112 = vector.load %arg4[%c0_40, %c0_41] : memref<1x1xf32, #tpu.memory_space<vmem>>, vector<1x1xf32>
      tpu.vector_store %arg4[%c0_40, %c0_41], %111 {strides = array<i32>} : memref<1x1xf32, #tpu.memory_space<vmem>>, vector<1x1xf32>,
    } else {
    }
    %c0 = arith.constant 0 : index
    %c0_1 = arith.constant 0 : index
    %c0_2 = arith.constant 0 : index
    %3 = vector.load %arg2[%c0, %c0_1, %c0_2] : memref<4x8x128xf32, #tpu.memory_space<vmem>>, vector<1x8x128xf32>
    %4 = vector.shape_cast %3 : vector<1x8x128xf32> to vector<8x128xf32>
    %c1 = arith.constant 1 : index
    %c0_3 = arith.constant 0 : index
    %c0_4 = arith.constant 0 : index
    %5 = vector.load %arg2[%c1, %c0_3, %c0_4] : memref<4x8x128xf32, #tpu.memory_space<vmem>>, vector<1x8x128xf32>
    %6 = vector.shape_cast %5 : vector<1x8x128xf32> to vector<8x128xf32>
    %c2 = arith.constant 2 : index
    %c0_5 = arith.constant 0 : index
    %c0_6 = arith.constant 0 : index
    %7 = vector.load %arg2[%c2, %c0_5, %c0_6] : memref<4x8x128xf32, #tpu.memory_space<vmem>>, vector<1x8x128xf32>
    %8 = vector.shape_cast %7 : vector<1x8x128xf32> to vector<8x128xf32>
    %c3 = arith.constant 3 : index
    %c0_7 = arith.constant 0 : index
    %c0_8 = arith.constant 0 : index
    %9 = vector.load %arg2[%c3, %c0_7, %c0_8] : memref<4x8x128xf32, #tpu.memory_space<vmem>>, vector<1x8x128xf32>
    %10 = vector.shape_cast %9 : vector<1x8x128xf32> to vector<8x128xf32>
    %c0_9 = arith.constant 0 : index
    %c0_10 = arith.constant 0 : index
    %c0_11 = arith.constant 0 : index
    %11 = vector.load %arg3[%c0_9, %c0_10, %c0_11] : memref<4x8x128xf32, #tpu.memory_space<vmem>>, vector<1x8x128xf32>
    %12 = vector.shape_cast %11 : vector<1x8x128xf32> to vector<8x128xf32>
    %c1_12 = arith.constant 1 : index
    %c0_13 = arith.constant 0 : index
    %c0_14 = arith.constant 0 : index
    %13 = vector.load %arg3[%c1_12, %c0_13, %c0_14] : memref<4x8x128xf32, #tpu.memory_space<vmem>>, vector<1x8x128xf32>
    %14 = vector.shape_cast %13 : vector<1x8x128xf32> to vector<8x128xf32>
    %c2_15 = arith.constant 2 : index
    %c0_16 = arith.constant 0 : index
    %c0_17 = arith.constant 0 : index
    %15 = vector.load %arg3[%c2_15, %c0_16, %c0_17] : memref<4x8x128xf32, #tpu.memory_space<vmem>>, vector<1x8x128xf32>
    %16 = vector.shape_cast %15 : vector<1x8x128xf32> to vector<8x128xf32>
    %c3_18 = arith.constant 3 : index
    %c0_19 = arith.constant 0 : index
    %c0_20 = arith.constant 0 : index
    %17 = vector.load %arg3[%c3_18, %c0_19, %c0_20] : memref<4x8x128xf32, #tpu.memory_space<vmem>>, vector<1x8x128xf32>
    %18 = vector.shape_cast %17 : vector<1x8x128xf32> to vector<8x128xf32>
    %19 = arith.subf %8, %4 : vector<8x128xf32>
    %20 = arith.subf %10, %6 : vector<8x128xf32>
    %cst = arith.constant 9.99999997E-7 : f32
    %21 = vector.broadcast %cst : f32 to vector<8x128xf32>
    %22 = arith.addf %20, %21 : vector<8x128xf32>
    %23 = arith.subf %16, %12 : vector<8x128xf32>
    %24 = arith.subf %18, %14 : vector<8x128xf32>
    %cst_21 = arith.constant 9.99999997E-7 : f32
    %25 = vector.broadcast %cst_21 : f32 to vector<8x128xf32>
    %26 = arith.addf %24, %25 : vector<8x128xf32>
    %27 = arith.minimumf %8, %16 : vector<8x128xf32>
    %28 = arith.maximumf %4, %12 : vector<8x128xf32>
    %29 = arith.subf %27, %28 : vector<8x128xf32>
    %cst_22 = arith.constant 0.000000e+00 : f32
    %30 = vector.broadcast %cst_22 : f32 to vector<8x128xf32>
    %31 = arith.maximumf %29, %30 : vector<8x128xf32>
    %32 = arith.minimumf %10, %18 : vector<8x128xf32>
    %33 = arith.maximumf %6, %14 : vector<8x128xf32>
    %34 = arith.subf %32, %33 : vector<8x128xf32>
    %cst_23 = arith.constant 0.000000e+00 : f32
    %35 = vector.broadcast %cst_23 : f32 to vector<8x128xf32>
    %36 = arith.maximumf %34, %35 : vector<8x128xf32>
    %37 = arith.mulf %31, %36 : vector<8x128xf32>
    %38 = arith.mulf %19, %22 : vector<8x128xf32>
    %39 = arith.mulf %23, %26 : vector<8x128xf32>
    %40 = arith.addf %38, %39 : vector<8x128xf32>
    %41 = arith.subf %40, %37 : vector<8x128xf32>
    %cst_24 = arith.constant 9.99999997E-7 : f32
    %42 = vector.broadcast %cst_24 : f32 to vector<8x128xf32>
    %43 = arith.addf %41, %42 : vector<8x128xf32>
    %44 = arith.divf %37, %43 : vector<8x128xf32>
    %45 = arith.minimumf %8, %4 : vector<8x128xf32>
    %46 = arith.minimumf %16, %12 : vector<8x128xf32>
    %47 = arith.subf %45, %46 : vector<8x128xf32>
    %48 = math.absf %47 : vector<8x128xf32>
    %49 = arith.maximumf %8, %4 : vector<8x128xf32>
    %50 = arith.maximumf %16, %12 : vector<8x128xf32>
    %51 = arith.subf %49, %50 : vector<8x128xf32>
    %52 = math.absf %51 : vector<8x128xf32>
    %53 = arith.minimumf %10, %6 : vector<8x128xf32>
    %54 = arith.minimumf %18, %14 : vector<8x128xf32>
    %55 = arith.subf %53, %54 : vector<8x128xf32>
    %56 = math.absf %55 : vector<8x128xf32>
    %57 = arith.maximumf %10, %6 : vector<8x128xf32>
    %58 = arith.maximumf %18, %14 : vector<8x128xf32>
    %59 = arith.subf %57, %58 : vector<8x128xf32>
    %60 = math.absf %59 : vector<8x128xf32>
    %61 = arith.addf %48, %52 : vector<8x128xf32>
    %62 = math.absf %23 : vector<8x128xf32>
    %63 = arith.divf %61, %62 : vector<8x128xf32>
    %64 = arith.addf %56, %60 : vector<8x128xf32>
    %65 = math.absf %26 : vector<8x128xf32>
    %66 = arith.divf %64, %65 : vector<8x128xf32>
    %67 = arith.addf %63, %66 : vector<8x128xf32>
    %cst_25 = arith.constant 2.500000e-01 : f32
    %68 = vector.broadcast %cst_25 : f32 to vector<8x128xf32>
    %69 = arith.mulf %67, %68 : vector<8x128xf32>
    %cst_26 = arith.constant 2.000000e+00 : f32
    %70 = vector.broadcast %cst_26 : f32 to vector<8x128xf32>
    %71 = arith.subf %70, %44 : vector<8x128xf32>
    %72 = arith.mulf %69, %69 : vector<8x128xf32>
    %cst_27 = arith.constant 0.000000e+00 : f32
    %73 = vector.broadcast %cst_27 : f32 to vector<8x128xf32>
    %74 = arith.subf %73, %72 : vector<8x128xf32>
    %75 = math.exp %74 : vector<8x128xf32>
    %76 = arith.subf %71, %75 : vector<8x128xf32>
    %cst_28 = arith.constant 0.000000e+00 : f32
    %77 = vector.broadcast %cst_28 : f32 to vector<8x128xf32>
    %78 = arith.subf %77, %69 : vector<8x128xf32>
    %79 = math.exp %78 : vector<8x128xf32>
    %cst_29 = arith.constant 1.300000e+00 : f32
    %80 = vector.broadcast %cst_29 : f32 to vector<8x128xf32>
    %81 = arith.mulf %79, %80 : vector<8x128xf32>
    %cst_30 = arith.constant 3.000000e+00 : f32
    %82 = vector.broadcast %cst_30 : f32 to vector<8x128xf32>
    %83 = arith.mulf %82, %81 : vector<8x128xf32>
    %84 = arith.mulf %81, %81 : vector<8x128xf32>
    %cst_31 = arith.constant 0.000000e+00 : f32
    %85 = vector.broadcast %cst_31 : f32 to vector<8x128xf32>
    %86 = arith.subf %85, %84 : vector<8x128xf32>
    %87 = math.exp %86 : vector<8x128xf32>
    %88 = arith.mulf %83, %87 : vector<8x128xf32>
    %89 = arith.mulf %88, %76 : vector<8x128xf32>
    %90 = tpu.iota {dimensions = array<i32: 0>} : vector<8x128xi32>
    %91 = tpu.iota {dimensions = array<i32: 1>} : vector<8x128xi32>
    %c8_i32 = arith.constant 8 : i32
    %92 = arith.muli %arg0, %c8_i32 : i32
    %93 = vector.broadcast %92 : i32 to vector<8x128xi32>
    %94 = arith.addi %93, %90 : vector<8x128xi32>
    %c128_i32 = arith.constant 128 : i32
    %95 = vector.broadcast %c128_i32 : i32 to vector<8x128xi32>
    %96 = arith.muli %94, %95 : vector<8x128xi32>
    %97 = arith.addi %96, %91 : vector<8x128xi32>
    %c0_32 = arith.constant 0 : index
    %98 = memref.load %arg1[%c0_32] : memref<1xi32, #tpu.memory_space<smem>>
    %99 = vector.broadcast %98 : i32 to vector<8x128xi32>
    %100 = arith.cmpi slt, %97, %99 : vector<8x128xi32>
    %cst_33 = arith.constant 0.000000e+00 : f32
    %101 = vector.broadcast %cst_33 : f32 to vector<8x128xf32>
    %102 = arith.select %100, %89, %101 : vector<8x128xi1>, vector<8x128xf32>
    %c0_34 = arith.constant 0 : index
    %c0_35 = arith.constant 0 : index
    %103 = vector.load %arg4[%c0_34, %c0_35] : memref<1x1xf32, #tpu.memory_space<vmem>>, vector<1x1xf32>
    %104 = vector.shape_cast %102 : vector<8x128xf32> to vector<1x8x128xf32>
    %cst_36 = arith.constant dense<0.000000e+00> : vector<1xf32>
    %105 = vector.multi_reduction <add>, %104, %cst_36 [1, 2] : vector<1x8x128xf32> to vector<1xf32>
    %106 = vector.shape_cast %105 : vector<1xf32> to vector<1x1x1xf32>
    %107 = vector.extract %106[0, 0, 0] : f32 from vector<1x1x1xf32>
    %108 = vector.broadcast %107 : f32 to vector<1x1xf32>
    %109 = arith.addf %103, %108 : vector<1x1xf32>
    %c0_37 = arith.constant 0 : index
    %c0_38 = arith.constant 0 : index
    %110 = vector.load %arg4[%c0_37, %c0_38] : memref<1x1xf32, #tpu.memory_space<vmem>>, vector<1x1xf32>
    tpu.vector_store %arg4[%c0_37, %c0_38], %109 {strides = array<i32>} : memref<1x1xf32, #tpu.memory_space<vmem>>, vector<1x1xf32>,
    return
  }
  func.func @transform_0(%arg0: i32, %arg1: memref<1xi32, #tpu.memory_space<smem>>) -> (i32, i32, i32) {
    %c0_i32 = arith.constant 0 : i32
    %c0_i32_0 = arith.constant 0 : i32
    %c0_i32_1 = arith.constant 0 : i32
    return %c0_i32, %arg0, %c0_i32_0 : i32, i32, i32
  }
  func.func @transform_1(%arg0: i32, %arg1: memref<1xi32, #tpu.memory_space<smem>>) -> (i32, i32, i32) {
    %c0_i32 = arith.constant 0 : i32
    %c0_i32_0 = arith.constant 0 : i32
    %c0_i32_1 = arith.constant 0 : i32
    return %c0_i32, %arg0, %c0_i32_0 : i32, i32, i32
  }
  func.func @transform_2(%arg0: i32, %arg1: memref<1xi32, #tpu.memory_space<smem>>) -> (i32, i32) {
    %c0_i32 = arith.constant 0 : i32
    %c0_i32_0 = arith.constant 0 : i32
    %c0_i32_1 = arith.constant 0 : i32
    return %c0_i32, %c0_i32_0 : i32, i32
  }
}

</mosaic_0001>

<bundles_post_ra>
// kernel: piou_loss_pallas.1
= control target key start
LH: loop header
LB: loop body
LE: loop exit
PB: predicated region body
PF: predicated region fallthrough
CT: control target
= control target key end

     0   :  { %s249_s0 = inlined_call_operand.<no memory space> [shape: s32[1], index: 0, kind: input, shape index: {}]   ;;  %s250_s1 = inlined_call_operand.vmem [shape: f32[4,8,128], index: 1, kind: input, shape index: {}]   ;;  %s251_s2 = inlined_call_operand.vmem [shape: f32[4,8,128], index: 2, kind: input, shape index: {}]   ;;  %s252_s3 = inlined_call_operand.hbm [shape: f32[1,1], index: 3, kind: output, shape index: {}]  }
   0x1   :  { %v20_v0 = vld [vmem:[%s250_s1] sm:$0xff]  ;;  %v141_v1 = vld [vmem:[%s250_s1 + $0x10] sm:$0xff]  ;;  %v143_v3 = vld [vmem:[%s251_s2 + $0x8] sm:$0xff] }
   0x2   :  { %v27_v2 = vld [vmem:[%s251_s2] sm:$0xff]  ;;  %v144_v4 = vld [vmem:[%s251_s2 + $0x10] sm:$0xff]  ;;  %v145_v5 = vld [vmem:[%s251_s2 + $0x18] sm:$0xff] }
   0x3   :  { %9 = vsyncpa [#allocation5], 0  ;;  %v38_v6 = vsub.f32 %v145_v5, %v143_v3  ;;  %v140_v7 = vld [vmem:[%s250_s1 + $0x8] sm:$0xff]  ;;  %v142_v8 = vld [vmem:[%s250_s1 + $0x18] sm:$0xff]  ;;  %v37_v9 = vsub.f32 %v144_v4, %v27_v2  ;;  %v56_v10 = vmin.f32 %v141_v1, %v20_v0  ;;  %v57_v12 = vmin.f32 %v144_v4, %v27_v2 }
   0x4   :  { %v60_v13 = vmax.f32 %v141_v1, %v20_v0  ;;  %v61_v14 = vmax.f32 %v144_v4, %v27_v2  ;;  %v64_v15 = vmin.f32 %v142_v8, %v140_v7  ;;  %v65_v16 = vmin.f32 %v145_v5, %v143_v3 }
   0x5   :  { %v39_v11 = vadd.f32 1e-06, %v38_v6  ;;  %v68_v17 = vmax.f32 %v142_v8, %v140_v7  ;;  %v69_v18 = vmax.f32 %v145_v5, %v143_v3  ;;  %v73_v19 = vand.u32 2147483647, %v37_v9 }
   0x6   :  { %v58_v20 = vsub.f32 %v56_v10, %v57_v12  ;;  %v62_v21 = vsub.f32 %v60_v13, %v61_v14  ;;  %v66_v23 = vsub.f32 %v64_v15, %v65_v16  ;;  %v35_v27 = vsub.f32 %v142_v8, %v140_v7 }
   0x7   :  { %v77_v22 = vand.u32 2147483647, %v39_v11  ;;  %v70_v24 = vsub.f32 %v68_v17, %v69_v18  ;;  %150 = vrcp.f32 %v73_v19  ;;  %v40_v30 = vmin.f32 %v141_v1, %v144_v4 }
   0x8   :  { %v59_v25 = vand.u32 2147483647, %v58_v20  ;;  %v63_v26 = vand.u32 2147483647, %v62_v21  ;;  %v67_v28 = vand.u32 2147483647, %v66_v23  ;;  %v41_v31 = vmax.f32 %v20_v0, %v27_v2 }
   0x9   :  { %152 = vrcp.f32 %v77_v22  ;;  %v71_v29 = vand.u32 2147483647, %v70_v24  ;;  %v44_v32 = vmin.f32 %v142_v8, %v145_v5  ;;  %v45_v33 = vmax.f32 %v140_v7, %v143_v3 }
   0xa   :  { %v72_v34 = vadd.f32 %v63_v26, %v59_v25  ;;  %v34_v36 = vsub.f32 %v141_v1, %v20_v0  ;;  %v36_v37 = vadd.f32 1e-06, %v35_v27  ;;  %v42_v38 = vsub.f32 %v40_v30, %v41_v31 }
   0xb   :  { %v76_v35 = vadd.f32 %v71_v29, %v67_v28  ;;  %v46_v39 = vsub.f32 %v44_v32, %v45_v33  ;;  %v50_v47 = vmul.f32 %v39_v11, %v37_v9  ;;  %v99_v63 = vlaneseq }
   0xc   :  { %v43_v44 = vmax.f32 %v42_v38, 0.0  ;;  %v49_v46 = vmul.f32 %v36_v37, %v34_v36  ;;  %v109_v11 = vstv %s249_s0  ;;  %vm18_vm1 = vcmask 0   ;;  %s187_s0 = smov [#allocation4]  }
   0xd   :  { %v47_v45 = vmax.f32 %v46_v39, 0.0  ;;  %v100_v2 = vshrl.u32 %v99_v63, 7  ;;  %v102_v4 = vand.u32 127, %v99_v63  ;;  %v186_v16 = vmov 0.0   ;;  %s132_s28 = sshll.u32 %s187_s0, 4  ;;  %s133_s28 = int_to_ptr.vmem [resolvable:$true] %s132_s28 }
   0xe   :  { %v51_v51 = vadd.f32 %v50_v47, %v49_v46  ;;  %19 = vst.msk [vmem:[#allocation4] sm:$0x1] %vm18_vm1, %v186_v16  ;;  %s162_s30 = scalar_lea.vmem %s133_s28, 16  ;;  %s166_s4 = scalar_lea.vmem %s133_s28, 32 }
   0xf   :  { %v48_v50 = vmul.f32 %v47_v45, %v43_v44  ;;  %v106_v5 = vmul.u32 128, %v100_v2  ;;  %p163_p0 = scmp.ne.s32.totalorder %s133_s28, %s162_s30  ;;  %p167_p1 = scmp.lt.s32.totalorder %s133_s28, %s133_s28 }
  0x10   :  { %p168_p2 = scmp.lt.s32.totalorder %s166_s4, %s162_s30 }
  0x11   :  { %v151_v40 = vpop.eup %150  ;;  %v52_v54 = vsub.f32 %v51_v51, %v48_v50  ;;  %v107_v9 = vadd.s32 %v106_v5, %v102_v4 }
  0x12   :  { %v75_v42 = vmul.f32 %v151_v40, %v72_v34  ;;  %p169_p3 = por %p168_p2, %p167_p1 }
  0x13   :  { %v153_v41 = vpop.eup %152  ;;  %v53_v55 = vadd.f32 1e-06, %v52_v54  ;;  %vm110_vm0 = vcmp.lt.s32.totalorder %v107_v9, %v109_v11 }
  0x14   :  { %v79_v43 = vmul.f32 %v153_v41, %v76_v35  ;;  %p170_p4 = pnand %p169_p3, %p163_p0 }
  0x15   :  { %v112_v24 = vld [vmem:[#allocation4] sm:$0x1] }
  0x16   :  { %v80_v48 = vadd.f32 %v79_v43, %v75_v42 }
  0x18   :  { %v81_v49 = vmul.f32 0.25, %v80_v48 }
  0x1a   :  { %v88_v52 = vsub.f32 0.0, %v81_v49  ;;  %v83_v56 = vmul.f32 %v81_v49, %v81_v49 }
  0x1c   :  { %v89_v53 = vmul.f32 1.442695, %v88_v52  ;;  %v84_v57 = vsub.f32 0.0, %v83_v56 }
  0x1e   :  { %154 = vpow2.f32 %v89_v53  ;;  %v85_v59 = vmul.f32 1.442695, %v84_v57 }
  0x1f   :  { %156 = vrcp.f32 %v53_v55 }
  0x20   :  { %158 = vpow2.f32 %v85_v59 }
  0x28   :  { %v155_v58 = vpop.eup %154 }
  0x29   :  { %v91_v60 = vmul.f32 1.3, %v155_v58  ;;  %v157_v0 = vpop.eup %156 }
  0x2a   :  { %v55_v3 = vmul.f32 %v157_v0, %v48_v50  ;;  %v159_v7 = vpop.eup %158 }
  0x2b   :  { %v93_v61 = vmul.f32 %v91_v60, %v91_v60  ;;  %v92_v8 = vmul.f32 3.0, %v91_v60 }
  0x2c   :  { %v82_v6 = vsub.f32 2.0, %v55_v3 }
  0x2d   :  { %v94_v62 = vsub.f32 0.0, %v93_v61 }
  0x2e   :  { %v87_v10 = vsub.f32 %v82_v6, %v159_v7 }
  0x2f   :  { %v95_v1 = vmul.f32 1.442695, %v94_v62 }
  0x31   :  { %160 = vpow2.f32 %v95_v1 }
  0x3b   :  { %v161_v12 = vpop.eup %160 }
  0x3c   :  { %v97_v13 = vmul.f32 %v161_v12, %v92_v8 }
  0x3e   :  { %v98_v14 = vmul.f32 %v97_v13, %v87_v10 }
  0x40   :  { %v111_v15 = vsel %vm110_vm0, %v98_v14, 0.0 }
  0x41   :  { %113 = vadd.xlane.f32.xlu0 %v111_v15 }
  0xce   :  { %v114_v17 = vpop.xlane.xlu0 %113 }
  0xcf   :  { %v115_v18 = vrot.slane %v114_v17, 4 }
  0xd1   :  { %v116_v19 = vadd.f32 %v115_v18, %v114_v17 }
  0xd3   :  { %v117_v20 = vrot.slane %v116_v19, 2 }
  0xd5   :  { %v118_v21 = vadd.f32 %v117_v20, %v116_v19 }
  0xd7   :  { %v119_v22 = vrot.slane %v118_v21, 1 }
  0xd9   :  { %v120_v23 = vadd.f32 %v119_v22, %v118_v21 }
  0xdb   :  { %146 = vpush %v120_v23 }
 0x10c   :  { %s147_s29 = spop %146 }
 0x10d   :  { %v122_v25 = vstv %s147_s29 }
 0x10e   :  { %v123_v26 = vadd.f32 %v122_v25, %v112_v24 }
 0x110   :  { %125 = vst.msk [vmem:[#allocation4] sm:$0x1] %vm18_vm1, %v123_v26 }
 0x111   :  { %173 = shalt.err (!%p170_p4)
}
 0x112   :  { %s174_s7 = scalar_lea.hbm %s252_s3, 16 }
 0x113   :  { %p175_p5 = scmp.ne.s32.totalorder %s252_s3, %s174_s7  ;;  %p178_p6 = scmp.lt.u32.totalorder %s174_s7, %s252_s3 }
 0x115   :  { %p180_p7 = pnand %p178_p6, %p175_p5 }
 0x117   :  { %183 = shalt.err (!%p180_p7)
}
 0x118   :  { %135 = dma.vmem_to_hbm [thread:$0]  %s133_s28, 16, %s252_s3, [#allocation5]  }
 0x119   :  { %184 = dma.done.wait [#allocation5], 16  }
 0x11a   :  { %185 = vsyncadd [#allocation5], 4294967280 }
 0x11b   :  { %139 = vsyncpa [#allocation5], 1 }

</bundles_post_ra>
